<compile_context>
chip_gen: v6e
topology: v6e:2x2x1
jax: 0.10.0
libtpu: 0.0.40
codegen_flags: <defaults>
</compile_context>

<pallas_src>
import jax
import jax.numpy as jnp
from jax.experimental import pallas as pl
from jax.experimental.pallas import tpu as pltpu

THRES = 0.3  # args.overall_method == 'conceptshap'


# ---------------------------------------------------------------------------
# Pallas kernel: per-position hot path in channel-major layout.
#   f_ref    : (C, TM)   feature columns (positions on lanes)
#   tvnT_ref : (K, C)    normalized topic vectors, transposed
#   r1T_ref  : (Hd, K)   rec_vector_1^T
#   r2T_ref  : (C, Hd)   rec_vector_2^T
# Outputs (all lane-dense along TM):
#   tpnT_ref  : (K, TM)  topic_prob_n^T
#   tpnnT_ref : (K, TM)  topic_prob_nn^T
#   rec2T_ref : (C, TM)  rec_layer_2^T
#   ae_ref    : (1, 8, 128) per-tile sum of squared AE error (broadcast fill)
# ---------------------------------------------------------------------------
def _topic_kernel(f_ref, tvnT_ref, r1T_ref, r2T_ref,
                  tpnT_ref, tpnnT_ref, rec2T_ref, ae_ref):
    f = f_ref[...]                                              # (C, TM)

    # F.normalize(dim=channel): x / max(||x||_2, 1e-12)
    # == x * rsqrt(max(||x||^2, 1e-24))   (EUP rsqrt, no second matmul needed)
    sq = jnp.sum(f * f, axis=0, keepdims=True)                  # (1, TM)
    inv_norm = jax.lax.rsqrt(jnp.maximum(sq, 1e-24))            # (1, TM)

    tvnT = tvnT_ref[...]                                        # (K, C)
    topic_prob = jnp.dot(tvnT, f, preferred_element_type=jnp.float32)   # (K, TM)
    # topic_prob_n is just a per-position rescale of topic_prob.
    topic_prob_n = topic_prob * inv_norm                                 # (K, TM)

    mask = (topic_prob_n > THRES).astype(jnp.float32)
    topic_prob_am = topic_prob * mask
    denom = jnp.sum(topic_prob_am, axis=0, keepdims=True) + 0.001 + 1e-8  # (1, TM)
    topic_prob_nn = topic_prob_am * pl.reciprocal(denom, approx=False)    # (K, TM)

    rec1 = jnp.maximum(
        jnp.dot(r1T_ref[...], topic_prob_nn, preferred_element_type=jnp.float32),
        0.0)                                                              # (Hd, TM)
    rec2 = jnp.dot(r2T_ref[...], rec1, preferred_element_type=jnp.float32)  # (C, TM)

    tpnT_ref[...] = topic_prob_n
    tpnnT_ref[...] = topic_prob_nn
    rec2T_ref[...] = rec2

    # Per-tile AE partial sum (disjoint output block per grid step => grid axis
    # can be "parallel"; the wrapper reduces the partials).
    f_n = f * inv_norm
    diff = f_n - rec2
    ae_ref[...] = jnp.full(ae_ref.shape, jnp.sum(diff * diff), dtype=jnp.float32)


# ---------------------------------------------------------------------------
# Wrapper: glue (layout plumbing, parameter normalization, classifier,
# top-k concept_sim, concept_far).
# ---------------------------------------------------------------------------
def topic_model_forward(f_input_nchw, topic_vector, rec_vector_1, rec_vector_2,
                        clf_w, clf_b, *, num_tiles=2):
    B, C, H, W = f_input_nchw.shape
    K = topic_vector.shape[1]
    Hd = rec_vector_1.shape[1]

    S = B * W * H
    assert S % num_tiles == 0, "position count must tile evenly"
    tm = S // num_tiles
    assert tm % 128 == 0, "tile lane-extent must be a multiple of 128"

    # PyTorch does swapaxes(1,3): (B,C,H,W)->(B,W,H,C); flattened row order is
    # (b, w, h). Channel-major columns with that same position order:
    # (B,C,H,W) -> (C,B,W,H) -> (C, S).
    f_cols = jnp.transpose(f_input_nchw, (1, 0, 3, 2)).reshape(C, S)
    f_cols = f_cols.astype(jnp.float32)

    # F.normalize(topic_vector, dim=0, p=2)
    tv_norm = jnp.sqrt(jnp.sum(topic_vector * topic_vector, axis=0, keepdims=True))
    tvn = topic_vector / jnp.maximum(tv_norm, 1e-12)            # (C, K)

    tvn_T = tvn.T.astype(jnp.float32)                           # (K, C)
    r1_T = rec_vector_1.T.astype(jnp.float32)                   # (Hd, K)
    r2_T = rec_vector_2.T.astype(jnp.float32)                   # (C, Hd)

    grid = (num_tiles,)
    tpnT, tpnnT, rec2T, ae_parts = pl.pallas_call(
        _topic_kernel,
        out_shape=(
            jax.ShapeDtypeStruct((K, S), jnp.float32),
            jax.ShapeDtypeStruct((K, S), jnp.float32),
            jax.ShapeDtypeStruct((C, S), jnp.float32),
            jax.ShapeDtypeStruct((num_tiles, 8, 128), jnp.float32),
        ),
        grid_spec=pltpu.PrefetchScalarGridSpec(
            num_scalar_prefetch=0,
            grid=grid,
            in_specs=[
                pl.BlockSpec((C, tm), lambda i: (0, i)),    # feature columns
                pl.BlockSpec((K, C), lambda i: (0, 0)),     # tvn^T
                pl.BlockSpec((Hd, K), lambda i: (0, 0)),    # rec_vector_1^T
                pl.BlockSpec((C, Hd), lambda i: (0, 0)),    # rec_vector_2^T
            ],
            out_specs=[
                pl.BlockSpec((K, tm), lambda i: (0, i)),        # topic_prob_n^T
                pl.BlockSpec((K, tm), lambda i: (0, i)),        # topic_prob_nn^T
                pl.BlockSpec((C, tm), lambda i: (0, i)),        # rec_layer_2^T
                pl.BlockSpec((1, 8, 128), lambda i: (i, 0, 0)),  # AE partial sums
            ],
        ),
        compiler_params=pltpu.CompilerParams(
            dimension_semantics=("parallel",)),
    )(f_cols, tvn_T, r1_T, r2_T)

    # ae_loss = MSELoss(f_input_n, rec_layer_2)  (mean over all elements)
    ae_loss = jnp.sum(ae_parts[:, 0, 0]) / jnp.float32(S * C)

    # topic_prob_nn returned in the swapped layout (B, W, H, K), as in PyTorch.
    topic_prob_nn = tpnnT.T.reshape(B, W, H, K)

    # rec_layer_2 back to NCHW for the classifier: (C, S) -> (C,B,W,H) -> (B,C,H,W)
    rec_layer_2_nchw = jnp.transpose(rec2T.reshape(C, B, W, H), (1, 0, 3, 2))

    # Frozen external classifier (toy): global average pool over HxW + linear.
    pooled = jnp.mean(rec_layer_2_nchw, axis=(2, 3))            # (B, C)
    pred = pooled @ clf_w + clf_b                               # (B, num_classes)

    # concept_sim: per-concept top-k (k = batch//4) over all positions, negated mean.
    # TODO(synk): top-k has no clean single-kernel Pallas equivalent; done in glue
    # (the kernel already emits the (K, S) layout top_k wants).
    k = max(B // 4, 1)
    topv, _ = jax.lax.top_k(tpnT, k)
    concept_sim = -jnp.mean(topv)

    # concept_far = mean(tvn^T @ tvn - I)
    concept_far = jnp.mean(tvn.T @ tvn - jnp.eye(K, dtype=jnp.float32))

    flip_loss = jnp.float32(0.0)  # causal == False branch
    return pred, flip_loss, concept_sim, concept_far, topic_prob_nn, ae_loss


# ---------------------------------------------------------------------------
# Pure-JAX reference (mirrors the PyTorch forward) for verification.
# ---------------------------------------------------------------------------
def _reference_forward(f_input_nchw, topic_vector, rec_vector_1, rec_vector_2,
                       clf_w, clf_b):
    B, C, H, W = f_input_nchw.shape
    K = topic_vector.shape[1]
    f = jnp.swapaxes(f_input_nchw, 1, 3)                                    # (B,W,H,C)
    f_n = f / jnp.maximum(jnp.linalg.norm(f, axis=-1, keepdims=True), 1e-12)
    tvn = topic_vector / jnp.maximum(
        jnp.linalg.norm(topic_vector, axis=0, keepdims=True), 1e-12)
    topic_prob = jnp.einsum('bxyz,zn->bxyn', f, tvn)
    topic_prob_n = jnp.einsum('bxyz,zn->bxyn', f_n, tvn)
    mask = (topic_prob_n > THRES).astype(jnp.float32)
    topic_prob_am = topic_prob * mask
    topic_prob_sum = jnp.sum(topic_prob_am, axis=-1, keepdims=True) + 0.001
    topic_prob_nn = topic_prob_am / (topic_prob_sum + 1e-8)
    rec1 = jax.nn.relu(jnp.einsum('bxyn,nh->bxyh', topic_prob_nn, rec_vector_1))
    rec2 = jnp.einsum('bxyh,hz->bxyz', rec1, rec_vector_2)
    ae_loss = jnp.mean((f_n - rec2) ** 2)
    rec2_nchw = jnp.swapaxes(rec2, 1, 3)
    pred = jnp.mean(rec2_nchw, axis=(2, 3)) @ clf_w + clf_b
    k = max(B // 4, 1)
    res = topic_prob_n.reshape(-1, K).T
    concept_sim = -jnp.mean(jax.lax.top_k(res, k)[0])
    concept_far = jnp.mean(tvn.T @ tvn - jnp.eye(K, dtype=jnp.float32))
    return pred, jnp.float32(0.0), concept_sim, concept_far, topic_prob_nn, ae_loss


if __name__ == "__main__":
    # Small shapes consistent with the toy forward path.
    B, C, H, W = 4, 8, 16, 16       # f_train.shape[1] == C (embedding dim)
    n_concept = 4
    hidden_dim = 32
    num_classes = 2

    key = jax.random.PRNGKey(0)
    k_f, k_tv, k_r1, k_r2, k_cw, k_cb = jax.random.split(key, 6)

    f_input = jax.random.normal(k_f, (B, C, H, W), dtype=jnp.float32)

    # init_concept: uniform(-0.5, 0.5) of the given shapes (deterministic here).
    topic_vector = jax.random.uniform(k_tv, (C, n_concept), jnp.float32, -0.5, 0.5)
    rec_vector_1 = jax.random.uniform(k_r1, (n_concept, hidden_dim), jnp.float32, -0.5, 0.5)
    rec_vector_2 = jax.random.uniform(k_r2, (hidden_dim, C), jnp.float32, -0.5, 0.5)

    # Frozen toy classifier parameters (global-avg-pool + linear).
    clf_w = jax.random.normal(k_cw, (C, num_classes), dtype=jnp.float32) * 0.1
    clf_b = jax.random.normal(k_cb, (num_classes,), dtype=jnp.float32) * 0.01

    out = topic_model_forward(f_input, topic_vector, rec_vector_1, rec_vector_2,
                              clf_w, clf_b, num_tiles=2)
    out = jax.block_until_ready(out)

    ref = _reference_forward(f_input, topic_vector, rec_vector_1, rec_vector_2,
                             clf_w, clf_b)
    ref = jax.block_until_ready(ref)

    names = ["pred", "flip_loss", "concept_sim", "concept_far",
             "topic_prob_nn", "ae_loss"]
    for name, a, b in zip(names, out, ref):
        assert jnp.allclose(a, b, atol=1e-5, rtol=1e-5), \
            f"mismatch in {name}: {a} vs {b}"

    print("KERNEL_OK")
</pallas_src>

<mosaic_0001>
module attributes {stable_mosaic.version = 11 : i64} {
  func.func @_topic_kernel(%arg0: i32, %arg1: memref<8x512xf32, #tpu.memory_space<vmem>>, %arg2: memref<4x8xf32, #tpu.memory_space<vmem>>, %arg3: memref<32x4xf32, #tpu.memory_space<vmem>>, %arg4: memref<8x32xf32, #tpu.memory_space<vmem>>, %arg5: memref<4x512xf32, #tpu.memory_space<vmem>>, %arg6: memref<4x512xf32, #tpu.memory_space<vmem>>, %arg7: memref<8x512xf32, #tpu.memory_space<vmem>>, %arg8: memref<1x8x128xf32, #tpu.memory_space<vmem>>) attributes {dimension_semantics = [#tpu.dimension_semantics<parallel>], iteration_bounds = array<i64: 2>, scalar_prefetch = 0 : i64, scratch_operands = 0 : i64, tpu.core_type = #tpu.core_type<tc>, window_params = [{transform_indices = @transform_0, window_bounds = array<i64: 8, 512>}, {pipeline_mode = #tpu.pipeline_mode<synchronous>, transform_indices = @transform_1, window_bounds = array<i64: 4, 8>}, {pipeline_mode = #tpu.pipeline_mode<synchronous>, transform_indices = @transform_2, window_bounds = array<i64: 32, 4>}, {pipeline_mode = #tpu.pipeline_mode<synchronous>, transform_indices = @transform_3, window_bounds = array<i64: 8, 32>}, {transform_indices = @transform_4, window_bounds = array<i64: 4, 512>}, {transform_indices = @transform_5, window_bounds = array<i64: 4, 512>}, {transform_indices = @transform_6, window_bounds = array<i64: 8, 512>}, {transform_indices = @transform_7, window_bounds = array<i64: 1, 8, 128>}]} {
    %c0 = arith.constant 0 : index
    %c0_0 = arith.constant 0 : index
    %0 = vector.load %arg1[%c0, %c0_0] : memref<8x512xf32, #tpu.memory_space<vmem>>, vector<8x512xf32>
    %1 = arith.mulf %0, %0 : vector<8x512xf32>
    %cst = arith.constant dense<0.000000e+00> : vector<512xf32>
    %2 = vector.multi_reduction <add>, %1, %cst [0] : vector<8x512xf32> to vector<512xf32>
    %3 = vector.shape_cast %2 : vector<512xf32> to vector<1x512xf32>
    %cst_1 = arith.constant 1.000000e-24 : f32
    %4 = vector.broadcast %cst_1 : f32 to vector<1x512xf32>
    %5 = arith.maximumf %3, %4 : vector<1x512xf32>
    %6 = math.rsqrt %5 : vector<1x512xf32>
    %c0_2 = arith.constant 0 : index
    %c0_3 = arith.constant 0 : index
    %7 = vector.load %arg2[%c0_2, %c0_3] : memref<4x8xf32, #tpu.memory_space<vmem>>, vector<4x8xf32>
    %cst_4 = arith.constant dense<0.000000e+00> : vector<4x512xf32>
    %8 = tpu.matmul %7, %0, %cst_4 {dimension_numbers = #tpu.dot_dimension_numbers<[1], [0], [0], [1], [0, 0, 1, 1], [], []>} : vector<4x8xf32>, vector<8x512xf32>, vector<4x512xf32> -> vector<4x512xf32>
    %9 = vector.broadcast %6 : vector<1x512xf32> to vector<4x512xf32>
    %10 = arith.mulf %8, %9 : vector<4x512xf32>
    %cst_5 = arith.constant 3.000000e-01 : f32
    %11 = vector.broadcast %cst_5 : f32 to vector<4x512xf32>
    %12 = arith.cmpf ogt, %10, %11 : vector<4x512xf32>
    %13 = arith.extui %12 : vector<4x512xi1> to vector<4x512xi32>
    %14 = arith.sitofp %13 : vector<4x512xi32> to vector<4x512xf32>
    %15 = arith.mulf %8, %14 : vector<4x512xf32>
    %cst_6 = arith.constant dense<0.000000e+00> : vector<512xf32>
    %16 = vector.multi_reduction <add>, %15, %cst_6 [0] : vector<4x512xf32> to vector<512xf32>
    %17 = vector.shape_cast %16 : vector<512xf32> to vector<1x512xf32>
    %cst_7 = arith.constant 1.000000e-03 : f32
    %18 = vector.broadcast %cst_7 : f32 to vector<1x512xf32>
    %19 = arith.addf %17, %18 : vector<1x512xf32>
    %cst_8 = arith.constant 9.99999993E-9 : f32
    %20 = vector.broadcast %cst_8 : f32 to vector<1x512xf32>
    %21 = arith.addf %19, %20 : vector<1x512xf32>
    %22 = tpu.reciprocal %21 : vector<1x512xf32> -> vector<1x512xf32>
    %23 = vector.broadcast %22 : vector<1x512xf32> to vector<4x512xf32>
    %24 = arith.mulf %15, %23 : vector<4x512xf32>
    %c0_9 = arith.constant 0 : index
    %c0_10 = arith.constant 0 : index
    %25 = vector.load %arg3[%c0_9, %c0_10] : memref<32x4xf32, #tpu.memory_space<vmem>>, vector<32x4xf32>
    %cst_11 = arith.constant dense<0.000000e+00> : vector<32x512xf32>
    %26 = tpu.matmul %25, %24, %cst_11 {dimension_numbers = #tpu.dot_dimension_numbers<[1], [0], [0], [1], [0, 0, 1, 1], [], []>} : vector<32x4xf32>, vector<4x512xf32>, vector<32x512xf32> -> vector<32x512xf32>
    %cst_12 = arith.constant 0.000000e+00 : f32
    %27 = vector.broadcast %cst_12 : f32 to vector<32x512xf32>
    %28 = arith.maximumf %26, %27 : vector<32x512xf32>
    %c0_13 = arith.constant 0 : index
    %c0_14 = arith.constant 0 : index
    %29 = vector.load %arg4[%c0_13, %c0_14] : memref<8x32xf32, #tpu.memory_space<vmem>>, vector<8x32xf32>
    %cst_15 = arith.constant dense<0.000000e+00> : vector<8x512xf32>
    %30 = tpu.matmul %29, %28, %cst_15 {dimension_numbers = #tpu.dot_dimension_numbers<[1], [0], [0], [1], [0, 0, 1, 1], [], []>} : vector<8x32xf32>, vector<32x512xf32>, vector<8x512xf32> -> vector<8x512xf32>
    %c0_16 = arith.constant 0 : index
    %c0_17 = arith.constant 0 : index
    %31 = vector.load %arg5[%c0_16, %c0_17] : memref<4x512xf32, #tpu.memory_space<vmem>>, vector<4x512xf32>
    tpu.vector_store %arg5[%c0_16, %c0_17], %10 {strides = array<i32>} : memref<4x512xf32, #tpu.memory_space<vmem>>, vector<4x512xf32>,
    %c0_18 = arith.constant 0 : index
    %c0_19 = arith.constant 0 : index
    %32 = vector.load %arg6[%c0_18, %c0_19] : memref<4x512xf32, #tpu.memory_space<vmem>>, vector<4x512xf32>
    tpu.vector_store %arg6[%c0_18, %c0_19], %24 {strides = array<i32>} : memref<4x512xf32, #tpu.memory_space<vmem>>, vector<4x512xf32>,
    %c0_20 = arith.constant 0 : index
    %c0_21 = arith.constant 0 : index
    %33 = vector.load %arg7[%c0_20, %c0_21] : memref<8x512xf32, #tpu.memory_space<vmem>>, vector<8x512xf32>
    tpu.vector_store %arg7[%c0_20, %c0_21], %30 {strides = array<i32>} : memref<8x512xf32, #tpu.memory_space<vmem>>, vector<8x512xf32>,
    %34 = vector.broadcast %6 : vector<1x512xf32> to vector<8x512xf32>
    %35 = arith.mulf %0, %34 : vector<8x512xf32>
    %36 = arith.subf %35, %30 : vector<8x512xf32>
    %37 = arith.mulf %36, %36 : vector<8x512xf32>
    %38 = vector.shape_cast %37 : vector<8x512xf32> to vector<1x8x512xf32>
    %cst_22 = arith.constant dense<0.000000e+00> : vector<1xf32>
    %39 = vector.multi_reduction <add>, %38, %cst_22 [1, 2] : vector<1x8x512xf32> to vector<1xf32>
    %40 = vector.shape_cast %39 : vector<1xf32> to vector<1x1x1xf32>
    %41 = vector.extract %40[0, 0, 0] : f32 from vector<1x1x1xf32>
    %42 = vector.broadcast %41 : f32 to vector<1x8x128xf32>
    %c0_23 = arith.constant 0 : index
    %c0_24 = arith.constant 0 : index
    %c0_25 = arith.constant 0 : index
    %43 = vector.load %arg8[%c0_23, %c0_24, %c0_25] : memref<1x8x128xf32, #tpu.memory_space<vmem>>, vector<1x8x128xf32>
    tpu.vector_store %arg8[%c0_23, %c0_24, %c0_25], %42 {strides = array<i32>} : memref<1x8x128xf32, #tpu.memory_space<vmem>>, vector<1x8x128xf32>,
    return
  }
  func.func @transform_0(%arg0: i32) -> (i32, i32) {
    %c0_i32 = arith.constant 0 : i32
    %c0_i32_0 = arith.constant 0 : i32
    return %c0_i32, %arg0 : i32, i32
  }
  func.func @transform_1(%arg0: i32) -> (i32, i32) {
    %c0_i32 = arith.constant 0 : i32
    %c0_i32_0 = arith.constant 0 : i32
    %c0_i32_1 = arith.constant 0 : i32
    return %c0_i32, %c0_i32_0 : i32, i32
  }
  func.func @transform_2(%arg0: i32) -> (i32, i32) {
    %c0_i32 = arith.constant 0 : i32
    %c0_i32_0 = arith.constant 0 : i32
    %c0_i32_1 = arith.constant 0 : i32
    return %c0_i32, %c0_i32_0 : i32, i32
  }
  func.func @transform_3(%arg0: i32) -> (i32, i32) {
    %c0_i32 = arith.constant 0 : i32
    %c0_i32_0 = arith.constant 0 : i32
    %c0_i32_1 = arith.constant 0 : i32
    return %c0_i32, %c0_i32_0 : i32, i32
  }
  func.func @transform_4(%arg0: i32) -> (i32, i32) {
    %c0_i32 = arith.constant 0 : i32
    %c0_i32_0 = arith.constant 0 : i32
    return %c0_i32, %arg0 : i32, i32
  }
  func.func @transform_5(%arg0: i32) -> (i32, i32) {
    %c0_i32 = arith.constant 0 : i32
    %c0_i32_0 = arith.constant 0 : i32
    return %c0_i32, %arg0 : i32, i32
  }
  func.func @transform_6(%arg0: i32) -> (i32, i32) {
    %c0_i32 = arith.constant 0 : i32
    %c0_i32_0 = arith.constant 0 : i32
    return %c0_i32, %arg0 : i32, i32
  }
  func.func @transform_7(%arg0: i32) -> (i32, i32, i32) {
    %c0_i32 = arith.constant 0 : i32
    %c0_i32_0 = arith.constant 0 : i32
    %c0_i32_1 = arith.constant 0 : i32
    return %arg0, %c0_i32, %c0_i32_0 : i32, i32, i32
  }
}

</mosaic_0001>

<bundles_post_ra>
// kernel: tpu_custom_call.1
= control target key start
LH: loop header
LB: loop body
LE: loop exit
PB: predicated region body
PF: predicated region fallthrough
CT: control target
= control target key end

     0   :  { %s1922_s0 = inlined_call_operand.hbm [shape: f32[8,1024], index: 0, kind: input, shape index: {}]   ;;  %s1923_s1 = inlined_call_operand.vmem [shape: f32[4,8], index: 1, kind: input, shape index: {}]   ;;  %s1924_s2 = inlined_call_operand.vmem [shape: f32[32,4], index: 2, kind: input, shape index: {}]   ;;  %s1925_s3 = inlined_call_operand.vmem [shape: f32[8,32], index: 3, kind: input, shape index: {}]   ;;  %s1926_s4 = inlined_call_operand.hbm [shape: f32[4,1024], index: 4, kind: output, shape index: {0}]   ;;  %s1927_s5 = inlined_call_operand.hbm [shape: f32[4,1024], index: 5, kind: output, shape index: {1}]   ;;  %s1928_s6 = inlined_call_operand.hbm [shape: f32[8,1024], index: 6, kind: output, shape index: {2}]   ;;  %s1929_s7 = inlined_call_operand.hbm [shape: f32[2,8,128], index: 7, kind: output, shape index: {3}]  }
   0x1   :  { %1933 = sst [smem:[#allocation15_spill]] %s1922_s0 }
   0x2   :  { %1934 = sst [smem:[#allocation16_spill]] %s1923_s1 }
   0x3   :  { %1935 = sst [smem:[#allocation17_spill]] %s1924_s2 }
   0x4   :  { %13 = vsyncpa [#allocation3], 0 }
   0x5   :  { %15 = vsyncpa [#allocation3 + $0x1], 0 }
   0x6   :  { %16 = vsyncpa [#allocation4], 0 }
   0x7   :  { %18 = vsyncpa [#allocation4 + $0x1], 0 }
   0x8   :  { %19 = vsyncpa [#allocation7], 0 }
   0x9   :  { %21 = vsyncpa [#allocation7 + $0x1], 0 }
   0xa   :  { %22 = vsyncpa [#allocation10], 0 }
   0xb   :  { %24 = vsyncpa [#allocation10 + $0x1], 0  ;;  %s1584_s24 = smov 0   ;;  %s1586_s25 = smov 0  }
   0xc   :  { %s1588_s26 = smov 0   ;;  %s1590_s27 = smov 0  }
   0xd LB: > { %s1605_s28 = sadd.s32 4294967295, %s1536_s27   ;;  %s1930_s29 = sadd.s32 4294967294, %s1536_s27   ;;  %s1536_s27 = sphi %s1590_s27, %s1954_s27   ;;  %s1532_s26 = sphi %s1588_s26, %s1953_s26   ;;  %s1528_s25 = sphi %s1586_s25, %s1952_s25   ;;  %s1524_s24 = sphi %s1584_s24, %s1951_s24  }
   0xe   : > { %s1609_s30 = sadd.s32 1, %s1536_s27   ;;  %s37_s8 = sadd.s32 1, %s1532_s26 }
   0xf   : > { %s34_s9 = ssub.s32 %s1536_s27, %s1609_s30  ;;  %p44_p0 = scmp.ne.s32.totalorder %s1532_s26, %s1528_s25 }
  0x10   : > { %p35_p1 = scmp.eq.s32.totalorder %s34_s9, 0  ;;  %p45_p2 = scmp.eq.s32.totalorder %s1536_s27, 0 }
  0x11   : > { %p50_p3 = scmp.ne.s32.totalorder %s1528_s25, %s1524_s24  ;;  %p51_p4 = scmp.eq.s32.totalorder %s1605_s28, 0 }
  0x12   : > { %s1621_s10 = scalar_select %p35_p1, %s1532_s26, %s37_s8  }
  0x13   : > { %p1623_p5 = por %p45_p2, %p44_p0  ;;  %p1627_p6 = por %p51_p4, %p50_p3 }
  0x14   : > { %p137_p7 = scmp.eq.s32.totalorder %s1605_s28, 1  ;;  %p143_p8 = scmp.eq.s32.totalorder %s1930_s29, 1 }
  0x15   : > { %s1937_s12 = scalar_select %p1627_p6, 1, 0 }
  0x16   : > { %p1307_p10 = scmp.lt.s32.totalorder %s1536_s27, 2  ;;  %p1636_p11 = por %p137_p7, %p44_p0 }
  0x17   : > { %p1640_p12 = por %p143_p8, %p50_p3  ;;  %s250_s15 = sand.u32 1, %s1532_s26  }
  0x18   : > { %s1938_s13 = scalar_select %p1636_p11, 1, 0 }
  0x19   : > { %s1939_s14 = scalar_select %p1640_p12, 1, 0 }
  0x1a   : > { %s1274_s16 = sshll.u32 %s1536_s27, 9  ;;  %s1232_s17 = sshll.u32 %s250_s15, 5 }
  0x1b   : > { %s1940_s0 = sld [smem:[#allocation15_spill]]  ;;  %s254_s21 = scalar_lea.vmem [#allocation2], %s1232_s17 }
  0x1c   : > { %s262_s22 = sshll.u32 %s254_s21, 4  ;;  %p1653_p13 = pnand %p1307_p10, %p1623_p5  ;;  %s1657_s22 = int_to_ptr.vmem [resolvable:$true] %s262_s22 }
  0x1d   : > { %s251_s8 = scalar_lea.sflag [#allocation3], %s250_s15 }
  0x1e   : > { %p1360_p3 = pneg %p1653_p13 }
  0x21   : > { %s1649_s20 = scalar_lea.hbm %s1940_s0, %s1274_s16  ;;  %s1363_s11 = scalar_lea.hbm %s1940_s0, 1024 }
  0x22   : > { %s1358_s9 = scalar_lea.hbm %s1649_s20, 512  ;;  %p1364_p5 = scmp.lt.s32.totalorder %s1649_s20, %s1940_s0 }
  0x23   : > { %p1359_p2 = scmp.ne.s32.totalorder %s1649_s20, %s1358_s9  ;;  %p1365_p8 = scmp.lt.s32.totalorder %s1363_s11, %s1358_s9 }
  0x25   : > { %p1361_p4 = pnand %p1360_p3, %p1359_p2  ;;  %p1366_p10 = por %p1365_p8, %p1364_p5 }
  0x27   : > { %p1362_p7 = pneg %p1361_p4 }
  0x29   : > { %p1367_p9 = pnand %p1366_p10, %p1362_p7 }
  0x2b   : > { %1370 = shalt.err (!%p1367_p9)
}
  0x2c   : > { %s1371_s15 = scalar_lea.vmem %s1657_s22, 512  ;;  %s1538_s21 = smov [#allocation2]  }
  0x2d   : > { %p1372_p0 = scmp.ne.s32.totalorder %s1657_s22, %s1371_s15  ;;  %s1376_s29 = sshll.u32 %s1538_s21, 4  ;;  %s1377_s29 = int_to_ptr.vmem [resolvable:$false] %s1376_s29 }
  0x2e   : > { %s1378_s16 = scalar_lea.vmem %s1377_s29, 1024  ;;  %p1379_p4 = scmp.lt.s32.totalorder %s1657_s22, %s1377_s29 }
  0x2f   : > { %p1374_p1 = pnand %p1372_p0, %p1360_p3  ;;  %p1380_p12 = scmp.lt.s32.totalorder %s1378_s16, %s1371_s15 }
  0x31   : > { %p1375_p2 = pneg %p1374_p1  ;;  %p1381_p11 = por %p1380_p12, %p1379_p4 }
  0x33   : > { %p1382_p6 = pnand %p1381_p11, %p1375_p2 }
  0x35   : > { %1385 = shalt.err (!%p1382_p6)
}
  0x36   : > { %1293 = dma.hbm_to_vmem [thread:$0]  (!%p1653_p13), %s1649_s20, 512, %s1657_s22, %s251_s8  }
  0x37   : > { %p1942_p9 = scmp.lt.s32.totalorder %s1536_s27, 3  ;;  %p1943_p7 = scmp.ge.s32.totalorder %s1536_s27, 1 }
  0x39   : > { %p268_p0 = pnand %p1943_p7, %p1942_p9 }
  0x3a   : > { %s1684_s9 = sand.u32 (!%p268_p0), 1, %s1528_s25   ;;  %p1944_p6 = scmp.ne.s32.totalorder (!%p268_p0), %s1937_s12, 0 }
  0x3b   : > { %271 = sbr.rel (%p268_p0) target bundleno = 944 (0x3b0), region = 36  ;;  %s1236_s29 = sshll.u32 (!%p268_p0), %s1684_s9, 5 }
  0x3c   : > { %s274_s17 = scalar_lea.sflag (!%p268_p0), [#allocation3], %s1684_s9  ;;  %s277_s23 = scalar_lea.vmem (!%p268_p0), [#allocation2], %s1236_s29 }
  0x40   : > { %1507 = dma.done.wait (%p1944_p6), %s274_s17, 512  }
  0x41   : > { %1509 = vsyncadd (%p1944_p6), %s274_s17, 4294966784  ;;  %v1539_v0 = vmov 0.0   ;;  %v1696_v1 = vld [vmem:[%s277_s23 + $0x8] sm:$0xff]  ;;  %v1698_v2 = vld [vmem:[%s277_s23 + $0x18] sm:$0xff]  ;;  %vm368_vm0 = vcmask 64512   ;;  %s1945_s1 = sld [smem:[#allocation16_spill]] }
  0x42   : > { %436 = vmatprep.mubr.f32.mxu0 %v1539_v0  ;;  %507 = vmatprep.mubr.f32.mxu1 %v1539_v0  ;;  %v1700_v3 = vld [vmem:[%s277_s23] sm:$0xff]  ;;  %v1704_v4 = vld [vmem:[%s277_s23 + $0x10] sm:$0xff]  ;;  %v332_v8 = vmul.f32 %v1696_v1, %v1696_v1  ;;  %v334_v9 = vmul.f32 %v1698_v2, %v1698_v2  ;;  %s1237_s22 = sshll.u32 %s1684_s9, 4  ;;  %vm534_vm3 = vcmask 1043456   ;;  %s1946_s2 = sld [smem:[#allocation17_spill]]  ;;  %vm583_vm6 = vcmask 31744  }
  0x43   : > { %402 = vmatprep.subr.mxu0 %v1696_v1  ;;  %473 = vmatprep.subr.mxu1 %v1698_v2  ;;  %v331_v6 = vmul.f32 %v1700_v3, %v1700_v3  ;;  %v333_v7 = vmul.f32 %v1704_v4, %v1704_v4  ;;  %s1741_s8 = scalar_lea.vmem [#allocation5], %s1237_s22  ;;  %s1758_s19 = scalar_lea.vmem [#allocation6], %s1237_s22  ;;  %vm803_vm7 = vcmask 261120  }
  0x44   : > { %403 = vmatpush1.msra.mxu0 %v1700_v3  ;;  %474 = vmatpush1.msra.mxu1 %v1704_v4  ;;  %v341_v12 = vrot.slane %v332_v8, 4  ;;  %v353_v13 = vrot.slane %v334_v9, 4  ;;  %s315_s11 = scalar_lea.vmem [#allocation8], %s1236_s29  ;;  %s1000_s18 = sand.u32 1, %s1605_s28  }
  0x45   : > { %v335_v10 = vrot.slane %v331_v6, 4  ;;  %v347_v11 = vrot.slane %v333_v7, 4  ;;  %s1053_s29 = sshll.u32 %s315_s11, 4  ;;  %s1275_s15 = sshll.u32 %s1605_s28, 8  ;;  %s1801_s29 = int_to_ptr.vmem [resolvable:$true] %s1053_s29 }
  0x46   : > { %v342_v16 = vadd.f32 %v341_v12, %v332_v8  ;;  %v354_v17 = vadd.f32 %v353_v13, %v334_v9  ;;  %s1806_s17 = scalar_lea.hbm %s1927_s5, %s1275_s15  ;;  %s1039_s23 = sshll.u32 %s1758_s19, 4  ;;  %s1040_s23 = int_to_ptr.vmem [resolvable:$true] %s1039_s23 }
  0x47   : > { %v367_v5 = vld [vmem:[%s1945_s1] sm:$0xf]  ;;  %v336_v14 = vadd.f32 %v335_v10, %v331_v6  ;;  %v348_v15 = vadd.f32 %v347_v11, %v333_v7  ;;  %s1812_s22 = scalar_lea.hbm %s1926_s4, %s1275_s15  ;;  %s1814_s0 = scalar_lea.sflag [#allocation7], %s1000_s18 }
  0x48   : > { %1241 = vmatmul.mubr.msk.f32.vlgmr.msra.gmra.mxu0 %vm368_vm0, %v367_v5  ;;  %1242 = vmatmul.mubr.msk.f32.vlgmr.msra.gmra.mxu1 %vm368_vm0, %v367_v5  ;;  %v343_v20 = vrot.slane %v342_v16, 2  ;;  %v355_v21 = vrot.slane %v354_v17, 2  ;;  %s1386_s1 = scalar_lea.vmem %s1040_s23, 256  ;;  %p1947_p12 = scmp.ne.s32.totalorder %s1938_s13, 0 }
  0x49   : > { %672 = vmatprep.mubr.f32.mxu0 %v1539_v0  ;;  %761 = vmatprep.mubr.f32.mxu1 %v1539_v0  ;;  %v337_v18 = vrot.slane %v336_v14, 2  ;;  %v349_v19 = vrot.slane %v348_v15, 2  ;;  %p1387_p11 = scmp.ne.s32.totalorder %s1040_s23, %s1386_s1 }
  0x4a   : > { %v344_v24 = vadd.f32 %v343_v20, %v342_v16  ;;  %v356_v25 = vadd.f32 %v355_v21, %v354_v17 }
  0x4b   : > { %v338_v22 = vadd.f32 %v337_v18, %v336_v14  ;;  %v350_v23 = vadd.f32 %v349_v19, %v348_v15  ;;  %p1388_p13 = pnand %p1387_p11, %p1947_p12 }
  0x4c   : > { %v345_v28 = vrot.slane %v344_v24, 1  ;;  %v357_v29 = vrot.slane %v356_v25, 1 }
  0x4d   : > { %v339_v26 = vrot.slane %v338_v22, 1  ;;  %v351_v27 = vrot.slane %v350_v23, 1  ;;  %p1389_p1 = pneg %p1388_p13 }
  0x4e   : > { %v346_v32 = vadd.f32 %v345_v28, %v344_v24  ;;  %v358_v33 = vadd.f32 %v357_v29, %v356_v25 }
  0x4f   : > { %v340_v30 = vadd.f32 %v339_v26, %v338_v22  ;;  %v352_v31 = vadd.f32 %v351_v27, %v350_v23 }
  0x50   : > { %v360_v36 = vmax.f32 %v346_v32, 1e-24  ;;  %v362_v37 = vmax.f32 %v358_v33, 1e-24 }
  0x51   : > { %v359_v34 = vmax.f32 %v340_v30, 1e-24  ;;  %v361_v35 = vmax.f32 %v352_v31, 1e-24 }
  0x53   : > { %1342 = vrsqrt.f32 %v359_v34 }
  0x54   : > { %1344 = vrsqrt.f32 %v361_v35 }
  0x55   : > { %1346 = vrsqrt.f32 %v360_v36 }
  0x56   : > { %1348 = vrsqrt.f32 %v362_v37 }
  0x60   : > { %v1721_v38 = vpop.eup %1342 }
  0x61   : > { %v1723_v39 = vpop.eup %1344 }
  0x62   : > { %v1725_v40 = vpop.eup %1346 }
  0x63   : > { %v1727_v41 = vpop.eup %1348 }
 0x108   : > { %v438_v42 = vpop.f32.mrf.mxu0  ;;  %v509_v43 = vpop.f32.mrf.mxu1 }
 0x109   : > { %v514_v44 = vmul.f32 %v1721_v38, %v438_v42  ;;  %v516_v45 = vmul.f32 %v1723_v39, %v509_v43 }
 0x10a   : > { %v440_v46 = vpop.f32.mrf.mxu0  ;;  %v511_v47 = vpop.f32.mrf.mxu1 }
 0x10b   : > { %vm518_vm1 = vcmp.gt.f32.partialorder %v514_v44, 0.3  ;;  %vm520_vm2 = vcmp.gt.f32.partialorder %v516_v45, 0.3  ;;  %v515_v48 = vmul.f32 %v1725_v40, %v440_v46  ;;  %v517_v49 = vmul.f32 %v1727_v41, %v511_v47 }
 0x10c   : > { %v1243_v50 = vsel %vm518_vm1, 1.0, %v1539_v0  ;;  %v1245_v51 = vsel %vm520_vm2, 1.0, %v1539_v0 }
 0x10d   : > { %v530_v52 = vmul.f32 %v1243_v50, %v438_v42  ;;  %v532_v53 = vmul.f32 %v1245_v51, %v509_v43  ;;  %vm519_vm4 = vcmp.gt.f32.partialorder %v515_v48, 0.3  ;;  %v953_v54 = vcombine.low %v514_v44, %v515_v48 }
 0x10e   : > { %v1244_v55 = vsel %vm519_vm4, 1.0, %v1539_v0  ;;  %vm521_vm5 = vcmp.gt.f32.partialorder %v517_v49, 0.3  ;;  %v954_v56 = vcombine.low %v516_v45, %v517_v49  ;;  %v579_v49 = vld [vmem:[%s1946_s2] sm:$0xff] }
 0x10f   : > { %v535_v57 = vsel %vm534_vm3, %v530_v52, 0.0  ;;  %v549_v58 = vsel %vm534_vm3, %v532_v53, 0.0  ;;  %v531_v59 = vmul.f32 %v1244_v55, %v440_v46  ;;  %957 = vst [vmem:[%s1741_s8] sm:$0xff] %v953_v54  ;;  %v1246_v60 = vsel %vm521_vm5, 1.0, %v1539_v0  ;;  %v582_v54 = vld [vmem:[%s1946_s2 + $0x18] sm:$0xff] }
 0x110   : > { %v536_v61 = vrot.slane %v535_v57, 4  ;;  %v550_v62 = vrot.slane %v549_v58, 4  ;;  %v533_v63 = vmul.f32 %v1246_v60, %v511_v47  ;;  %958 = vst [vmem:[%s1741_s8 + $0x8] sm:$0xff] %v954_v56 }
 0x111   : > { %v542_v5 = vsel %vm534_vm3, %v531_v59, 0.0 }
 0x112   : > { %v537_v6 = vadd.f32 %v536_v61, %v535_v57  ;;  %v551_v7 = vadd.f32 %v550_v62, %v549_v58  ;;  %v543_v8 = vrot.slane %v542_v5, 4  ;;  %v556_v9 = vsel %vm534_vm3, %v533_v63, 0.0 }
 0x113   : > { %v557_v10 = vrot.slane %v556_v9, 4 }
 0x114   : > { %v538_v11 = vrot.slane %v537_v6, 2  ;;  %v552_v12 = vrot.slane %v551_v7, 2  ;;  %v544_v13 = vadd.f32 %v543_v8, %v542_v5 }
 0x115   : > { %v558_v14 = vadd.f32 %v557_v10, %v556_v9 }
 0x116   : > { %v539_v15 = vadd.f32 %v538_v11, %v537_v6  ;;  %v553_v16 = vadd.f32 %v552_v12, %v551_v7  ;;  %v545_v17 = vrot.slane %v544_v13, 2 }
 0x117   : > { %v559_v18 = vrot.slane %v558_v14, 2 }
 0x118   : > { %v540_v19 = vrot.slane %v539_v15, 1  ;;  %v554_v20 = vrot.slane %v553_v16, 1  ;;  %v546_v21 = vadd.f32 %v545_v17, %v544_v13 }
 0x119   : > { %v560_v22 = vadd.f32 %v559_v18, %v558_v14 }
 0x11a   : > { %v541_v23 = vadd.f32 %v540_v19, %v539_v15  ;;  %v555_v24 = vadd.f32 %v554_v20, %v553_v16  ;;  %v547_v25 = vrot.slane %v546_v21, 1 }
 0x11b   : > { %v561_v26 = vrot.slane %v560_v22, 1 }
 0x11c   : > { %v563_v27 = vadd.f32 0.001, %v541_v23  ;;  %v565_v28 = vadd.f32 0.001, %v555_v24  ;;  %v548_v29 = vadd.f32 %v547_v25, %v546_v21 }
 0x11d   : > { %v562_v30 = vadd.f32 %v561_v26, %v560_v22  ;;  %v802_v26 = vld [vmem:[%s1925_s3] sm:$0xff] }
 0x11e   : > { %v567_v31 = vadd.f32 1e-08, %v563_v27  ;;  %v569_v32 = vadd.f32 1e-08, %v565_v28  ;;  %v564_v33 = vadd.f32 0.001, %v548_v29  ;;  %v969_v28 = vmul.f32 %v1721_v38, %v1700_v3 }
 0x11f   : > { %v566_v34 = vadd.f32 0.001, %v562_v30  ;;  %v971_v29 = vmul.f32 %v1723_v39, %v1704_v4  ;;  %v970_v30 = vmul.f32 %v1725_v40, %v1696_v1 }
 0x120   : > { %1350 = vrcp.f32 %v567_v31  ;;  %v568_v35 = vadd.f32 1e-08, %v564_v33 }
 0x121   : > { %1352 = vrcp.f32 %v569_v32  ;;  %v570_v36 = vadd.f32 1e-08, %v566_v34  ;;  %v972_v34 = vmul.f32 %v1727_v41, %v1698_v2 }
 0x122   : > { %1354 = vrcp.f32 %v568_v35 }
 0x123   : > { %1356 = vrcp.f32 %v570_v36 }
 0x12d   : > { %v1351_v37 = vpop.eup %1350 }
 0x12e   : > { %v1353_v42 = vpop.eup %1352  ;;  %v575_v45 = vmul.f32 %v1351_v37, %v530_v52  ;;  %v580_v52 = vld [vmem:[%s1946_s2 + $0x8] sm:$0xff] }
 0x12f   : > { %v1355_v43 = vpop.eup %1354  ;;  %v577_v47 = vmul.f32 %v1353_v42, %v532_v53  ;;  %v581_v53 = vld [vmem:[%s1946_s2 + $0x10] sm:$0xff] }
 0x130   : > { %v1357_v44 = vpop.eup %1356  ;;  %v576_v46 = vmul.f32 %v1355_v43, %v531_v59 }
 0x131   : > { %v578_v48 = vmul.f32 %v1357_v44, %v533_v63 }
 0x132   : > { %v959_v50 = vcombine.low %v575_v45, %v576_v46  ;;  %1247 = vmatprep.subr.msk.mxu0 %vm534_vm3, %v576_v46 }
 0x133   : > { %v960_v51 = vcombine.low %v577_v47, %v578_v48  ;;  %1253 = vmatprep.subr.msk.mxu1 %vm534_vm3, %v578_v48  ;;  %1248 = vmatpush1.msk.msra.mxu0 %vm534_vm3, %v575_v45 }
 0x134   : > { %1254 = vmatpush1.msk.msra.mxu1 %vm534_vm3, %v577_v47  ;;  %1249 = vmatmul.mubr.msk.f32.vlgmr.msra.gmra.mxu0 %vm583_vm6, %v579_v49  ;;  %963 = vst [vmem:[%s1758_s19] sm:$0xff] %v959_v50 }
 0x135   : > { %1255 = vmatmul.mubr.msk.f32.vlgmr.msra.gmra.mxu1 %vm583_vm6, %v579_v49  ;;  %678 = vmatprep.mubr.f32.mxu0 %v1539_v0  ;;  %964 = vst [vmem:[%s1758_s19 + $0x8] sm:$0xff] %v960_v51 }
 0x136   : > { %767 = vmatprep.mubr.f32.mxu1 %v1539_v0 }
 0x138   : > { %1250 = vmatmul.mubr.msk.f32.gmra.mxu0 %vm583_vm6, %v580_v52 }
 0x139   : > { %1256 = vmatmul.mubr.msk.f32.gmra.mxu1 %vm583_vm6, %v580_v52  ;;  %684 = vmatprep.mubr.f32.mxu0 %v1539_v0 }
 0x13a   : > { %773 = vmatprep.mubr.f32.mxu1 %v1539_v0 }
 0x13c   : > { %1251 = vmatmul.mubr.msk.f32.gmra.mxu0 %vm583_vm6, %v581_v53 }
 0x13d   : > { %1257 = vmatmul.mubr.msk.f32.gmra.mxu1 %vm583_vm6, %v581_v53  ;;  %690 = vmatprep.mubr.f32.mxu0 %v1539_v0 }
 0x13e   : > { %779 = vmatprep.mubr.f32.mxu1 %v1539_v0 }
 0x140   : > { %1252 = vmatmul.mubr.msk.f32.gmra.mxu0 %vm583_vm6, %v582_v54 }
 0x141   : > { %1258 = vmatmul.mubr.msk.f32.gmra.mxu1 %vm583_vm6, %v582_v54  ;;  %871 = vmatprep.mubr.f32.mxu0 %v1539_v0 }
 0x142   : > { %942 = vmatprep.mubr.f32.mxu1 %v1539_v0 }
 0x1f4   : > { %v674_v55 = vpop.f32.mrf.mxu0 }
 0x1f5   : > { %v763_v56 = vpop.f32.mrf.mxu1  ;;  %v786_v24 = vmax.f32 %v674_v55, 0.0 }
 0x1f6   : > { %v676_v57 = vpop.f32.mrf.mxu0  ;;  %v788_v27 = vmax.f32 %v763_v56, 0.0 }
 0x1f7   : > { %v765_v58 = vpop.f32.mrf.mxu1  ;;  %v787_v22 = vmax.f32 %v676_v57, 0.0 }
 0x1f8   : > { %v680_v59 = vpop.f32.mrf.mxu0  ;;  %v789_v25 = vmax.f32 %v765_v58, 0.0 }
 0x1f9   : > { %v769_v60 = vpop.f32.mrf.mxu1  ;;  %v790_v20 = vmax.f32 %v680_v59, 0.0 }
 0x1fa   : > { %v682_v61 = vpop.f32.mrf.mxu0  ;;  %v792_v23 = vmax.f32 %v769_v60, 0.0 }
 0x1fb   : > { %v771_v62 = vpop.f32.mrf.mxu1  ;;  %v791_v18 = vmax.f32 %v682_v61, 0.0 }
 0x1fc   : > { %v686_v63 = vpop.f32.mrf.mxu0  ;;  %v793_v21 = vmax.f32 %v771_v62, 0.0 }
 0x1fd   : > { %v775_v5 = vpop.f32.mrf.mxu1  ;;  %v794_v16 = vmax.f32 %v686_v63, 0.0 }
 0x1fe   : > { %v688_v6 = vpop.f32.mrf.mxu0  ;;  %v796_v19 = vmax.f32 %v775_v5, 0.0 }
 0x1ff   : > { %v777_v7 = vpop.f32.mrf.mxu1  ;;  %v795_v15 = vmax.f32 %v688_v6, 0.0 }
 0x200   : > { %v692_v8 = vpop.f32.mrf.mxu0  ;;  %v797_v17 = vmax.f32 %v777_v7, 0.0 }
 0x201   : > { %v781_v9 = vpop.f32.mrf.mxu1  ;;  %v798_v14 = vmax.f32 %v692_v8, 0.0 }
 0x202   : > { %v694_v10 = vpop.f32.mrf.mxu0  ;;  %v800_v11 = vmax.f32 %v781_v9, 0.0 }
 0x203   : > { %v799_v12 = vmax.f32 %v694_v10, 0.0  ;;  %v783_v13 = vpop.f32.mrf.mxu1 }
 0x204   : > { %v801_v0 = vmax.f32 %v783_v13, 0.0 }
 0x205   : > { %831 = vmatprep.subr.mxu0 %v799_v12 }
 0x206   : > { %902 = vmatprep.subr.mxu1 %v801_v0  ;;  %832 = vmatpush1.msra.mxu0 %v798_v14 }
 0x207   : > { %903 = vmatpush1.msra.mxu1 %v800_v11  ;;  %833 = vmatprep.subr.mxu0 %v795_v15 }
 0x208   : > { %904 = vmatprep.subr.mxu1 %v797_v17  ;;  %834 = vmatpush1.msra.mxu0 %v794_v16 }
 0x209   : > { %905 = vmatpush1.msra.mxu1 %v796_v19  ;;  %835 = vmatprep.subr.mxu0 %v791_v18 }
 0x20a   : > { %906 = vmatprep.subr.mxu1 %v793_v21  ;;  %836 = vmatpush1.msra.mxu0 %v790_v20 }
 0x20b   : > { %907 = vmatpush1.msra.mxu1 %v792_v23  ;;  %837 = vmatprep.subr.mxu0 %v787_v22 }
 0x20c   : > { %908 = vmatprep.subr.mxu1 %v789_v25  ;;  %838 = vmatpush1.msra.mxu0 %v786_v24 }
 0x20d   : > { %909 = vmatpush1.msra.mxu1 %v788_v27  ;;  %1259 = vmatmul.mubr.msk.f32.vlgmr.msra.gmra.mxu0 %vm803_vm7, %v802_v26 }
 0x20e   : > { %1260 = vmatmul.mubr.msk.f32.vlgmr.msra.gmra.mxu1 %vm803_vm7, %v802_v26 }
 0x2cd   : > { %v873_v31 = vpop.f32.mrf.mxu0 }
 0x2ce   : > { %965 = vst [vmem:[%s315_s11] sm:$0xff] %v873_v31  ;;  %v973_v32 = vsub.f32 %v969_v28, %v873_v31  ;;  %v944_v33 = vpop.f32.mrf.mxu1 }
 0x2cf   : > { %v875_v35 = vpop.f32.mrf.mxu0  ;;  %967 = vst [vmem:[%s315_s11 + $0x10] sm:$0xff] %v944_v33  ;;  %v975_v36 = vsub.f32 %v971_v29, %v944_v33 }
 0x2d0   : > { %966 = vst [vmem:[%s315_s11 + $0x8] sm:$0xff] %v875_v35  ;;  %v974_v3 = vsub.f32 %v970_v30, %v875_v35  ;;  %v946_v4 = vpop.f32.mrf.mxu1  ;;  %v977_v1 = vmul.f32 %v973_v32, %v973_v32 }
 0x2d1   : > { %968 = vst [vmem:[%s315_s11 + $0x18] sm:$0xff] %v946_v4  ;;  %v979_v39 = vmul.f32 %v975_v36, %v975_v36  ;;  %v976_v40 = vsub.f32 %v972_v34, %v946_v4  ;;  %s1540_s11 = smov [#allocation6]  }
 0x2d2   : > { %v978_v38 = vmul.f32 %v974_v3, %v974_v3  ;;  %s1390_s2 = sshll.u32 %s1540_s11, 4  ;;  %s1391_s2 = int_to_ptr.vmem [resolvable:$false] %s1390_s2 }
 0x2d3   : > { %v980_v42 = vmul.f32 %v976_v40, %v976_v40  ;;  %s1392_s21 = scalar_lea.vmem %s1391_s2, 512  ;;  %p1393_p3 = scmp.lt.s32.totalorder %s1040_s23, %s1391_s2 }
 0x2d4   : > { %v981_v37 = vadd.f32 %v978_v38, %v977_v1  ;;  %p1394_p5 = scmp.lt.s32.totalorder %s1392_s21, %s1386_s1 }
 0x2d6   : > { %v982_v43 = vadd.f32 %v981_v37, %v979_v39  ;;  %p1395_p8 = por %p1394_p5, %p1393_p3 }
 0x2d8   : > { %v983_v44 = vadd.f32 %v982_v43, %v980_v42  ;;  %p1396_p10 = pnand %p1395_p8, %p1389_p1 }
 0x2da   : > { %984 = vadd.xlane.f32.xlu0 %v983_v44 }
 0x2db   : > { %1399 = shalt.err (!%p1396_p10)
}
 0x2dc   : > { %s1400_s19 = scalar_lea.hbm %s1806_s17, 256  ;;  %s1404_s16 = scalar_lea.hbm %s1927_s5, 512 }
 0x2dd   : > { %p1401_p2 = scmp.ne.s32.totalorder %s1806_s17, %s1400_s19  ;;  %p1405_p7 = scmp.lt.s32.totalorder %s1806_s17, %s1927_s5 }
 0x2de   : > { %p1406_p0 = scmp.lt.s32.totalorder %s1404_s16, %s1400_s19 }
 0x2df   : > { %p1402_p4 = pnand %p1401_p2, %p1947_p12 }
 0x2e0   : > { %p1407_p6 = por %p1406_p0, %p1405_p7 }
 0x2e1   : > { %p1403_p9 = pneg %p1402_p4 }
 0x2e3   : > { %p1408_p11 = pnand %p1407_p6, %p1403_p9 }
 0x2e5   : > { %1411 = shalt.err (!%p1408_p11)
}
 0x2e6   : > { %1283 = dma.vmem_to_hbm [thread:$0]  (%p1947_p12), %s1040_s23, 256, %s1806_s17, %s1814_s0  }
 0x2e7   : > { %s1025_s1 = sshll.u32 %s1741_s8, 4  ;;  %s1277_s2 = sshll.u32 %s1605_s28, 9  ;;  %s1026_s1 = int_to_ptr.vmem [resolvable:$true] %s1025_s1 }
 0x2e8   : > { %s1838_s18 = scalar_lea.hbm %s1928_s6, %s1277_s2  ;;  %s996_s19 = scalar_lea.sflag [#allocation4], %s1684_s9 }
 0x2e9   : > { %s1412_s15 = scalar_lea.vmem %s1026_s1, 256  ;;  %s1541_s16 = smov [#allocation5]  }
 0x2ea   : > { %p1413_p13 = scmp.ne.s32.totalorder %s1026_s1, %s1412_s15  ;;  %s1416_s12 = sshll.u32 %s1541_s16, 4  ;;  %s1417_s12 = int_to_ptr.vmem [resolvable:$false] %s1416_s12 }
 0x2eb   : > { %s1418_s20 = scalar_lea.vmem %s1417_s12, 512  ;;  %p1419_p5 = scmp.lt.s32.totalorder %s1026_s1, %s1417_s12 }
 0x2ec   : > { %p1414_p1 = pnand %p1413_p13, %p1947_p12  ;;  %p1420_p8 = scmp.lt.s32.totalorder %s1418_s20, %s1412_s15 }
 0x2ee   : > { %p1415_p3 = pneg %p1414_p1  ;;  %p1421_p10 = por %p1420_p8, %p1419_p5 }
 0x2f0   : > { %p1422_p2 = pnand %p1421_p10, %p1415_p3 }
 0x2f2   : > { %1425 = shalt.err (!%p1422_p2)
}
 0x2f3   : > { %s1426_s8 = scalar_lea.hbm %s1812_s22, 256  ;;  %s1430_s2 = scalar_lea.hbm %s1926_s4, 512 }
 0x2f4   : > { %p1427_p4 = scmp.ne.s32.totalorder %s1812_s22, %s1426_s8  ;;  %p1431_p0 = scmp.lt.s32.totalorder %s1812_s22, %s1926_s4 }
 0x2f5   : > { %p1432_p6 = scmp.lt.s32.totalorder %s1430_s2, %s1426_s8 }
 0x2f6   : > { %p1428_p9 = pnand %p1427_p4, %p1947_p12 }
 0x2f7   : > { %p1433_p11 = por %p1432_p6, %p1431_p0 }
 0x2f8   : > { %p1429_p7 = pneg %p1428_p9 }
 0x2fa   : > { %p1434_p13 = pnand %p1433_p11, %p1429_p7 }
 0x2fc   : > { %1437 = shalt.err (!%p1434_p13)
}
 0x2fd   : > { %1282 = dma.vmem_to_hbm [thread:$0]  (%p1947_p12), %s1026_s1, 256, %s1812_s22, %s996_s19  }
 0x2fe   : > { %s1438_s15 = scalar_lea.vmem %s1801_s29, 512  ;;  %s1542_s16 = smov [#allocation8]  }
 0x2ff   : > { %p1439_p1 = scmp.ne.s32.totalorder %s1801_s29, %s1438_s15  ;;  %s1442_s12 = sshll.u32 %s1542_s16, 4  ;;  %s1443_s12 = int_to_ptr.vmem [resolvable:$false] %s1442_s12 }
 0x300   : > { %s1444_s20 = scalar_lea.vmem %s1443_s12, 1024  ;;  %p1445_p8 = scmp.lt.s32.totalorder %s1801_s29, %s1443_s12 }
 0x301   : > { %p1440_p3 = pnand %p1439_p1, %p1947_p12  ;;  %p1446_p10 = scmp.lt.s32.totalorder %s1444_s20, %s1438_s15 }
 0x303   : > { %p1441_p5 = pneg %p1440_p3  ;;  %p1447_p2 = por %p1446_p10, %p1445_p8 }
 0x305   : > { %p1448_p4 = pnand %p1447_p2, %p1441_p5 }
 0x307   : > { %1451 = shalt.err (!%p1448_p4)
}
 0x308   : > { %s1452_s8 = scalar_lea.hbm %s1838_s18, 512  ;;  %s1456_s19 = scalar_lea.hbm %s1928_s6, 1024 }
 0x309   : > { %p1453_p9 = scmp.ne.s32.totalorder %s1838_s18, %s1452_s8  ;;  %p1457_p6 = scmp.lt.s32.totalorder %s1838_s18, %s1928_s6 }
 0x30a   : > { %p1458_p11 = scmp.lt.s32.totalorder %s1456_s19, %s1452_s8 }
 0x30b   : > { %p1454_p7 = pnand %p1453_p9, %p1947_p12 }
 0x30c   : > { %p1459_p13 = por %p1458_p11, %p1457_p6 }
 0x30d   : > { %p1455_p0 = pneg %p1454_p7 }
 0x30f   : > { %p1460_p1 = pnand %p1459_p13, %p1455_p0 }
 0x311   : > { %1463 = shalt.err (!%p1460_p1)
}
 0x312   : > { %1284 = dma.vmem_to_hbm [thread:$0]  (%p1947_p12), %s1801_s29, 512, %s1838_s18, %s1814_s0  }
 0x313   : > { %s1240_s2 = sshll.u32 %s1684_s9, 3  ;;  %s1271_s15 = sshll.u32 %s1605_s28, 7 }
 0x314   : > { %s322_s11 = scalar_lea.vmem [#allocation9], %s1240_s2  ;;  %s1064_s16 = scalar_lea.hbm %s1929_s7, %s1271_s15 }
 0x315   : > { %s1066_s21 = sshll.u32 %s322_s11, 4  ;;  %s1011_s12 = scalar_lea.sflag [#allocation10], %s1684_s9  ;;  %s1880_s21 = int_to_ptr.vmem [resolvable:$true] %s1066_s21 }
 0x316   : > { %s1464_s20 = scalar_lea.vmem %s1880_s21, 128  ;;  %s1543_s8 = smov [#allocation9]  }
 0x317   : > { %p1465_p3 = scmp.ne.s32.totalorder %s1880_s21, %s1464_s20  ;;  %s1468_s28 = sshll.u32 %s1543_s8, 4  ;;  %s1469_s28 = int_to_ptr.vmem [resolvable:$false] %s1468_s28 }
 0x318   : > { %s1470_s22 = scalar_lea.vmem %s1469_s28, 256  ;;  %p1471_p10 = scmp.lt.s32.totalorder %s1880_s21, %s1469_s28 }
 0x319   : > { %p1466_p5 = pnand %p1465_p3, %p1947_p12  ;;  %p1472_p2 = scmp.lt.s32.totalorder %s1470_s22, %s1464_s20 }
 0x31b   : > { %p1467_p8 = pneg %p1466_p5  ;;  %p1473_p4 = por %p1472_p2, %p1471_p10 }
 0x31d   : > { %p1474_p9 = pnand %p1473_p4, %p1467_p8 }
 0x363   : > { %v985_v2 = vpop.xlane.xlu0 %984 }
 0x364   : > { %v986_v41 = vrot.slane %v985_v2, 4 }
 0x366   : > { %v987_v45 = vadd.f32 %v986_v41, %v985_v2 }
 0x368   : > { %v988_v46 = vrot.slane %v987_v45, 2 }
 0x36a   : > { %v989_v47 = vadd.f32 %v988_v46, %v987_v45 }
 0x36c   : > { %v990_v48 = vrot.slane %v989_v47, 1 }
 0x36e   : > { %v991_v49 = vadd.f32 %v990_v48, %v989_v47 }
 0x370   : > { %1278 = vpush %v991_v49 }
 0x3a1   : > { %s1279_s0 = spop %1278 }
 0x3a2   : > { %v993_v50 = vstv %s1279_s0 }
 0x3a3   : > { %994 = vst [vmem:[%s322_s11] sm:$0xff] %v993_v50 }
 0x3a4   : > { %1477 = shalt.err (!%p1474_p9)
}
 0x3a5   : > { %s1478_s1 = scalar_lea.hbm %s1064_s16, 128  ;;  %s1482_s17 = scalar_lea.hbm %s1929_s7, 256 }
 0x3a6   : > { %p1479_p7 = scmp.ne.s32.totalorder %s1064_s16, %s1478_s1  ;;  %p1483_p11 = scmp.lt.s32.totalorder %s1064_s16, %s1929_s7 }
 0x3a7   : > { %p1484_p13 = scmp.lt.s32.totalorder %s1482_s17, %s1478_s1 }
 0x3a8   : > { %p1480_p0 = pnand %p1479_p7, %p1947_p12 }
 0x3a9   : > { %p1485_p1 = por %p1484_p13, %p1483_p11 }
 0x3aa   : > { %p1481_p6 = pneg %p1480_p0 }
 0x3ac   : > { %p1486_p3 = pnand %p1485_p1, %p1481_p6 }
 0x3ae   : > { %1489 = shalt.err (!%p1486_p3)
}
 0x3af   : > { %1285 = dma.vmem_to_hbm [thread:$0]  (%p1947_p12), %s1880_s21, 128, %s1064_s16, %s1011_s12  }
 0x3b0 PF: > { %s1078_s11 = sand.u32 1, %s1524_s24   ;;  %p1948_p5 = scmp.ne.s32.totalorder %s1939_s14, 0 }
 0x3b1   : > { %p1949_p8 = scmp.ge.s32.totalorder %s1536_s27, 2  ;;  %s1079_s15 = scalar_lea.sflag [#allocation4], %s1078_s11 }
 0x3b3   : > { %p1295_p10 = pnand %p1949_p8, %p1948_p5 }
 0x3b5   : > { %p1296_p2 = pneg %p1295_p10 }
 0x3b7   : > { %1511 = dma.done.wait (%p1296_p2), %s1079_s15, 256  }
 0x3b8   : > { %1513 = vsyncadd (%p1296_p2), %s1079_s15, 4294967040  ;;  %s1950_s0 = sadd.s32 4294967294, %s1536_s27  }
 0x3b9   : > { %s1087_s29 = sand.u32 1, %s1950_s0  }
 0x3ba   : > { %s1088_s18 = scalar_lea.sflag [#allocation7], %s1087_s29 }
 0x3bb   : > { %1515 = dma.done.wait (%p1296_p2), %s1088_s18, 768  }
 0x3bc   : > { %1517 = vsyncadd (%p1296_p2), %s1088_s18, 4294966528  ;;  %s1106_s13 = scalar_lea.sflag [#allocation10], %s1078_s11 }
 0x3bd   : > { %1519 = dma.done.wait (%p1296_p2), %s1106_s13, 128  }
 0x3be   : > { %1521 = vsyncadd (%p1296_p2), %s1106_s13, 4294967168  ;;  %p27_p12 = scmp.ge.s32.totalorder %s1609_s30, 4   ;;  %s1951_s24 = smov %s1528_s25 }
 0x3bf   : > { %s1952_s25 = smov %s1532_s26  ;;  %s1953_s26 = smov %s1621_s10 }
 0x3c0   : > { %s1954_s27 = smov %s1609_s30  ;;  %29 = sbr.rel (!%p27_p12) target bundleno = 13 (0xd), region = 130 }
 0x3c5   :  { %1111 = vsyncpa [#allocation3], 1 }
 0x3c6   :  { %1113 = vsyncpa [#allocation3 + $0x1], 1 }
 0x3c7   :  { %1114 = vsyncpa [#allocation4], 1 }
 0x3c8   :  { %1116 = vsyncpa [#allocation4 + $0x1], 1 }
 0x3c9   :  { %1117 = vsyncpa [#allocation7], 1 }
 0x3ca   :  { %1119 = vsyncpa [#allocation7 + $0x1], 1 }
 0x3cb   :  { %1120 = vsyncpa [#allocation10], 1 }
 0x3cc   :  { %1122 = vsyncpa [#allocation10 + $0x1], 1 }

</bundles_post_ra>
